<compile_context>
chip_gen: v7x
topology: tpu7x:2x2x1
jax: 0.10.0
libtpu: 0.0.40
codegen_flags: <defaults>
</compile_context>

<pallas_src>
import math
import jax
import jax.numpy as jnp
import numpy as np
from jax.experimental import pallas as pl
from jax.experimental.pallas import tpu as pltpu


_VMEM_LIMIT_BYTES = 64 * 1024 * 1024   # <= physical VMEM on v5e/v6e/v7x


def _round_up(x, m):
    return ((x + m - 1) // m) * m


def _pick_tile(hp, ihp, weight_vmem_budget=32 * 1024 * 1024):
    """Lane tile tn (multiple of 128 dividing Hp).

    Double-buffered (IHp, 4*tn) bf16 weight blocks cost 16*IHp*tn bytes, so
    tn is capped by the weight VMEM budget; additionally force >= 2 grid
    steps when possible so v7x's second TensorCore gets work.
    """
    cap = max(128, (weight_vmem_budget // (16 * ihp)) // 128 * 128)
    tn = 128
    for t in (512, 256):
        if t <= cap and hp % t == 0:
            tn = t
            break
    if hp // tn < 2 and hp >= 256:
        half = hp // 2
        tn = half if half % 128 == 0 else 128
    return tn


def prepare_dslstm_params(weight_ih, weight_hh, bias_ih, bias_hh,
                          compute_dtype=jnp.bfloat16):
    """One-time parameter packing (hoisted out of the recurrent step).

    weight_ih: (4H, I), weight_hh: (4H, H), biases: (4H,)  (torch layout).
    Returns one packed matrix of shape (IHp, 4*Hp) in `compute_dtype`, where
    IHp = Ip + Hp + 128 (x rows | h rows | folded-bias row group) and columns
    are interleaved per lane tile as [i_j | f_j | g_j | o_j] for tile j.
    """
    four_h, input_size = weight_ih.shape
    hidden_size = weight_hh.shape[1]
    assert four_h == 4 * hidden_size and weight_hh.shape[0] == four_h

    ip = _round_up(input_size, 128)
    hp = _round_up(hidden_size, 128)
    ihp = ip + hp + 128                       # extra lane group for the bias
    tn = _pick_tile(hp, ihp)
    n_tiles = hp // tn

    bias = (bias_ih + bias_hh).astype(jnp.float32)

    gate_mats = []
    for g in range(4):
        wih_g = weight_ih[g * hidden_size:(g + 1) * hidden_size, :]   # (H, I)
        whh_g = weight_hh[g * hidden_size:(g + 1) * hidden_size, :]   # (H, H)
        b_g = bias[g * hidden_size:(g + 1) * hidden_size]             # (H,)
        w = jnp.zeros((ihp, hp), jnp.float32)
        w = w.at[:input_size, :hidden_size].set(wih_g.T.astype(jnp.float32))
        w = w.at[ip:ip + hidden_size, :hidden_size].set(
            whh_g.T.astype(jnp.float32))
        # xh's last 128 lanes are all ones; only this row carries the bias.
        w = w.at[ip + hp, :hidden_size].set(b_g)
        gate_mats.append(w)

    cols = []
    for j in range(n_tiles):
        for g in range(4):
            cols.append(gate_mats[g][:, j * tn:(j + 1) * tn])
    w_packed = jnp.concatenate(cols, axis=1).astype(compute_dtype)  # (IHp,4Hp)
    return w_packed


# ---------------------------------------------------------------------------
# Single-step (module forward) kernel: streams one packed weight tile per
# hidden lane tile; one DMA + one MXU contraction per grid step.
# ---------------------------------------------------------------------------
def _lstm_cell_step_kernel(xh_ref, c_ref, w_ref, h_out_ref, c_out_ref):
    tn = w_ref.shape[1] // 4
    # Single fused contraction over [x | h | bias-ones]; f32 accumulation.
    pre = jnp.dot(xh_ref[...], w_ref[...],
                  preferred_element_type=jnp.float32)          # (Bp, 4*tn)
    i_g = jax.nn.sigmoid(pre[:, 0 * tn:1 * tn])
    f_g = jax.nn.sigmoid(pre[:, 1 * tn:2 * tn])
    g_g = jnp.tanh(pre[:, 2 * tn:3 * tn])
    o_g = jax.nn.sigmoid(pre[:, 3 * tn:4 * tn])

    c_new = f_g * c_ref[...] + i_g * g_g                       # f32 state
    h_new = o_g * jnp.tanh(c_new)

    c_out_ref[...] = c_new
    h_out_ref[...] = h_new.astype(h_out_ref.dtype)


def _ds_lstm_cell_impl(x, h, c, w_packed):
    batch, input_size = x.shape
    hidden_size = h.shape[1]
    ip = _round_up(input_size, 128)
    hp = _round_up(hidden_size, 128)
    ihp = ip + hp + 128
    assert w_packed.shape == (ihp, 4 * hp)
    tn = _pick_tile(hp, ihp)
    n_tiles = hp // tn
    bp = _round_up(max(batch, 1), 8)
    cdt = w_packed.dtype

    x_p = jnp.pad(x.astype(cdt), ((0, bp - batch), (0, ip - input_size)))
    h_p = jnp.pad(h.astype(cdt), ((0, bp - batch), (0, hp - hidden_size)))
    ones = jnp.ones((bp, 128), cdt)                 # folded-bias lane group
    xh = jnp.concatenate([x_p, h_p, ones], axis=1)  # (Bp, IHp)
    c_p = jnp.pad(c.astype(jnp.float32),
                  ((0, bp - batch), (0, hp - hidden_size)))

    row_spec = pl.BlockSpec((bp, tn), lambda j: (0, j))
    h_out, c_out = pl.pallas_call(
        _lstm_cell_step_kernel,
        out_shape=(
            jax.ShapeDtypeStruct((bp, hp), jnp.float32),   # h'
            jax.ShapeDtypeStruct((bp, hp), jnp.float32),   # c'
        ),
        grid=(n_tiles,),
        in_specs=[
            pl.BlockSpec((bp, ihp), lambda j: (0, 0)),     # xh, resident
            row_spec,                                       # c tile
            pl.BlockSpec((ihp, 4 * tn), lambda j: (0, j)),  # packed weights
        ],
        out_specs=(row_spec, row_spec),
        compiler_params=pltpu.CompilerParams(
            dimension_semantics=("parallel",),
            vmem_limit_bytes=_VMEM_LIMIT_BYTES),
    )(xh, c_p, w_packed)

    h_new = h_out[:batch, :hidden_size].astype(x.dtype)
    c_new = c_out[:batch, :hidden_size].astype(c.dtype)
    return h_new, c_new


_ds_lstm_cell_jit = jax.jit(_ds_lstm_cell_impl)


def ds_lstm_cell(x, hx, w_packed):
    """Pallas-backed DSLSTMCell.forward: returns (output, (h_new, c_new))."""
    h, c = hx
    h_new, c_new = _ds_lstm_cell_jit(x, h, c, w_packed)
    return h_new, (h_new, c_new)


# ---------------------------------------------------------------------------
# Persistent recurrence kernel: the whole time loop in one pallas_call with
# the packed weights VMEM-resident (constant index_map -> single HBM load).
# ---------------------------------------------------------------------------
def _ds_lstm_scan_impl(xs, h0, c0, w_packed):
    T, batch, input_size = xs.shape
    hidden_size = h0.shape[1]
    ip = _round_up(input_size, 128)
    hp = _round_up(hidden_size, 128)
    ihp = ip + hp + 128
    assert w_packed.shape == (ihp, 4 * hp)
    tn = _pick_tile(hp, ihp)
    n_tiles = hp // tn
    bp = _round_up(max(batch, 1), 8)
    cdt = w_packed.dtype

    xs_p = jnp.pad(xs.astype(cdt),
                   ((0, 0), (0, bp - batch), (0, ip - input_size)))
    h0_p = jnp.pad(h0.astype(jnp.float32),
                   ((0, bp - batch), (0, hp - hidden_size)))
    c0_p = jnp.pad(c0.astype(jnp.float32),
                   ((0, bp - batch), (0, hp - hidden_size)))

    def kernel(x_ref, h0_ref, c0_ref, w_ref,
               hseq_ref, hfin_ref, cfin_ref,
               xh_sc, h_sc, c_sc):
        t = pl.program_id(0)

        @pl.when(t == 0)
        def _init():
            # Folded-bias lane group = 1; initial state into scratch.
            xh_sc[:, ip + hp:] = jnp.ones((bp, 128), xh_sc.dtype)
            h_sc[...] = h0_ref[...].astype(h_sc.dtype)
            c_sc[...] = c0_ref[...]

        # Rebuild the fused LHS in VMEM (lane-group-aligned stores only).
        xh_sc[:, :ip] = x_ref[0]
        xh_sc[:, ip:ip + hp] = h_sc[...]

        # One MXU push for all gates / all lane tiles; f32 accumulation.
        pre = jnp.dot(xh_sc[...], w_ref[...],
                      preferred_element_type=jnp.float32)      # (Bp, 4*Hp)

        for j in range(n_tiles):
            base = 4 * tn * j
            i_g = jax.nn.sigmoid(pre[:, base + 0 * tn:base + 1 * tn])
            f_g = jax.nn.sigmoid(pre[:, base + 1 * tn:base + 2 * tn])
            g_g = jnp.tanh(pre[:, base + 2 * tn:base + 3 * tn])
            o_g = jax.nn.sigmoid(pre[:, base + 3 * tn:base + 4 * tn])
            c_new = f_g * c_sc[:, j * tn:(j + 1) * tn] + i_g * g_g
            h_new = o_g * jnp.tanh(c_new)
            c_sc[:, j * tn:(j + 1) * tn] = c_new
            h_sc[:, j * tn:(j + 1) * tn] = h_new.astype(h_sc.dtype)

        hseq_ref[0] = h_sc[...]                                 # bf16 writeback

        @pl.when(t == pl.num_programs(0) - 1)
        def _final():
            hfin_ref[...] = h_sc[...].astype(hfin_ref.dtype)
            cfin_ref[...] = c_sc[...]

    h_seq, h_fin, c_fin = pl.pallas_call(
        kernel,
        out_shape=(
            jax.ShapeDtypeStruct((T, bp, hp), cdt),            # h per step
            jax.ShapeDtypeStruct((bp, hp), jnp.float32),       # final h
            jax.ShapeDtypeStruct((bp, hp), jnp.float32),       # final c
        ),
        grid=(T,),
        in_specs=[
            pl.BlockSpec((1, bp, ip), lambda t: (t, 0, 0)),    # x_t stream
            pl.BlockSpec((bp, hp), lambda t: (0, 0)),          # h0 (resident)
            pl.BlockSpec((bp, hp), lambda t: (0, 0)),          # c0 (resident)
            pl.BlockSpec((ihp, 4 * hp), lambda t: (0, 0)),     # weights: DMA'd
                                                               # once, resident
        ],
        out_specs=(
            pl.BlockSpec((1, bp, hp), lambda t: (t, 0, 0)),
            pl.BlockSpec((bp, hp), lambda t: (0, 0)),
            pl.BlockSpec((bp, hp), lambda t: (0, 0)),
        ),
        scratch_shapes=[
            pltpu.VMEM((bp, ihp), cdt),          # fused LHS [x | h | ones]
            pltpu.VMEM((bp, hp), cdt),           # h state (bf16 = MXU LHS)
            pltpu.VMEM((bp, hp), jnp.float32),   # c state (f32)
        ],
        compiler_params=pltpu.CompilerParams(
            dimension_semantics=("arbitrary",),                # recurrence
            vmem_limit_bytes=_VMEM_LIMIT_BYTES),
    )(xs_p, h0_p, c0_p, w_packed)

    h_seq = h_seq[:, :batch, :hidden_size]
    h_T = h_fin[:batch, :hidden_size].astype(xs.dtype)
    c_T = c_fin[:batch, :hidden_size].astype(c0.dtype)
    return h_seq, h_T, c_T


_ds_lstm_scan_jit = jax.jit(_ds_lstm_scan_impl)


def ds_lstm_scan(xs, hx, w_packed):
    """Apply the cell over a (T, B, I) sequence with weights VMEM-resident.

    Returns (h_seq [bf16, (T,B,H)], (h_T, c_T)).
    """
    h0, c0 = hx
    h_seq, h_T, c_T = _ds_lstm_scan_jit(xs, h0, c0, w_packed)
    return h_seq, (h_T, c_T)


def _reference_lstm_cell(x, hx, weight_ih, weight_hh, bias_ih, bias_hh):
    """Pure-JAX f32 reference mirroring torch.lstm_cell for validation."""
    h, c = hx
    H = h.shape[1]
    gates = x @ weight_ih.T + h @ weight_hh.T + bias_ih + bias_hh
    i = jax.nn.sigmoid(gates[:, 0 * H:1 * H])
    f = jax.nn.sigmoid(gates[:, 1 * H:2 * H])
    g = jnp.tanh(gates[:, 2 * H:3 * H])
    o = jax.nn.sigmoid(gates[:, 3 * H:4 * H])
    c_new = f * c + i * g
    h_new = o * jnp.tanh(c_new)
    return h_new, c_new


if __name__ == "__main__":
    # Small shapes consistent with the module's forward.
    batch, input_size, hidden_size, seq_len = 2, 16, 32, 8
    num_chunks = 4  # LSTM

    key = jax.random.PRNGKey(0)
    k_x, k_xs, k_h, k_c, k_wih, k_whh, k_bih, k_bhh = jax.random.split(key, 8)

    # Deterministic parameter init matching reset_parameters():
    #   uniform(-stdv, stdv) with stdv = 1/sqrt(hidden_size).
    stdv = 1.0 / math.sqrt(hidden_size)
    weight_ih = jax.random.uniform(
        k_wih, (num_chunks * hidden_size, input_size),
        minval=-stdv, maxval=stdv, dtype=jnp.float32)
    weight_hh = jax.random.uniform(
        k_whh, (num_chunks * hidden_size, hidden_size),
        minval=-stdv, maxval=stdv, dtype=jnp.float32)
    bias_ih = jax.random.uniform(
        k_bih, (num_chunks * hidden_size,), minval=-stdv, maxval=stdv,
        dtype=jnp.float32)
    bias_hh = jax.random.uniform(
        k_bhh, (num_chunks * hidden_size,), minval=-stdv, maxval=stdv,
        dtype=jnp.float32)

    x = jax.random.normal(k_x, (batch, input_size), dtype=jnp.float32)
    xs = jax.random.normal(k_xs, (seq_len, batch, input_size),
                           dtype=jnp.float32)
    h0 = jax.random.normal(k_h, (batch, hidden_size), dtype=jnp.float32)
    c0 = jax.random.normal(k_c, (batch, hidden_size), dtype=jnp.float32)

    # One-time parameter packing (hoisted out of the recurrent step).
    w_packed = prepare_dslstm_params(weight_ih, weight_hh, bias_ih, bias_hh)

    # --- single-step (module forward semantics) ---
    output, (h_new, c_new) = ds_lstm_cell(x, (h0, c0), w_packed)
    jax.block_until_ready((output, h_new, c_new))

    h_ref, c_ref = _reference_lstm_cell(
        x, (h0, c0), weight_ih, weight_hh, bias_ih, bias_hh)
    np.testing.assert_allclose(np.asarray(h_new), np.asarray(h_ref),
                               rtol=2e-2, atol=2e-2)
    np.testing.assert_allclose(np.asarray(c_new), np.asarray(c_ref),
                               rtol=2e-2, atol=2e-2)

    # --- persistent recurrence (weights resident in VMEM across T steps) ---
    h_seq, (h_T, c_T) = ds_lstm_scan(xs, (h0, c0), w_packed)
    jax.block_until_ready((h_seq, h_T, c_T))

    hr, cr = h0, c0
    hs_ref = []
    for t in range(seq_len):
        hr, cr = _reference_lstm_cell(
            xs[t], (hr, cr), weight_ih, weight_hh, bias_ih, bias_hh)
        hs_ref.append(hr)
    hs_ref = jnp.stack(hs_ref, axis=0)

    np.testing.assert_allclose(np.asarray(h_seq.astype(jnp.float32)),
                               np.asarray(hs_ref), rtol=5e-2, atol=5e-2)
    np.testing.assert_allclose(np.asarray(h_T), np.asarray(hr),
                               rtol=5e-2, atol=5e-2)
    np.testing.assert_allclose(np.asarray(c_T), np.asarray(cr),
                               rtol=5e-2, atol=5e-2)

    print("KERNEL_OK")
</pallas_src>

<mosaic_0001>
module attributes {stable_mosaic.version = 11 : i64} {
  func.func @_lstm_cell_step_kernel(%arg0: i32, %arg1: memref<8x384xbf16, #tpu.memory_space<vmem>>, %arg2: memref<8x128xf32, #tpu.memory_space<vmem>>, %arg3: memref<384x512xbf16, #tpu.memory_space<vmem>>, %arg4: memref<8x128xf32, #tpu.memory_space<vmem>>, %arg5: memref<8x128xf32, #tpu.memory_space<vmem>>) attributes {dimension_semantics = [#tpu.dimension_semantics<parallel>], iteration_bounds = array<i64: 1>, scalar_prefetch = 0 : i64, scratch_operands = 0 : i64, tpu.core_type = #tpu.core_type<tc>, window_params = [{pipeline_mode = #tpu.pipeline_mode<synchronous>, transform_indices = @transform_0, window_bounds = array<i64: 8, 384>}, {transform_indices = @transform_1, window_bounds = array<i64: 8, 128>}, {transform_indices = @transform_2, window_bounds = array<i64: 384, 512>}, {transform_indices = @transform_3, window_bounds = array<i64: 8, 128>}, {transform_indices = @transform_4, window_bounds = array<i64: 8, 128>}]} {
    %c0 = arith.constant 0 : index
    %c0_0 = arith.constant 0 : index
    %0 = vector.load %arg1[%c0, %c0_0] : memref<8x384xbf16, #tpu.memory_space<vmem>>, vector<8x384xbf16>
    %c0_1 = arith.constant 0 : index
    %c0_2 = arith.constant 0 : index
    %1 = vector.load %arg3[%c0_1, %c0_2] : memref<384x512xbf16, #tpu.memory_space<vmem>>, vector<384x512xbf16>
    %cst = arith.constant dense<0.000000e+00> : vector<8x512xf32>
    %2 = tpu.matmul %0, %1, %cst {dimension_numbers = #tpu.dot_dimension_numbers<[1], [0], [0], [1], [0, 0, 1, 1], [], []>} : vector<8x384xbf16>, vector<384x512xbf16>, vector<8x512xf32> -> vector<8x512xf32>
    %3 = vector.extract_strided_slice %2 {offsets = [0, 0], sizes = [8, 128], strides = [1, 1]} : vector<8x512xf32> to vector<8x128xf32>
    %4 = arith.negf %3 : vector<8x128xf32>
    %5 = math.exp %4 : vector<8x128xf32>
    %cst_3 = arith.constant 1.000000e+00 : f32
    %6 = vector.broadcast %cst_3 : f32 to vector<8x128xf32>
    %7 = arith.addf %6, %5 : vector<8x128xf32>
    %8 = arith.divf %6, %7 : vector<8x128xf32>
    %9 = vector.extract_strided_slice %2 {offsets = [0, 128], sizes = [8, 128], strides = [1, 1]} : vector<8x512xf32> to vector<8x128xf32>
    %10 = arith.negf %9 : vector<8x128xf32>
    %11 = math.exp %10 : vector<8x128xf32>
    %cst_4 = arith.constant 1.000000e+00 : f32
    %12 = vector.broadcast %cst_4 : f32 to vector<8x128xf32>
    %13 = arith.addf %12, %11 : vector<8x128xf32>
    %14 = arith.divf %12, %13 : vector<8x128xf32>
    %15 = vector.extract_strided_slice %2 {offsets = [0, 256], sizes = [8, 128], strides = [1, 1]} : vector<8x512xf32> to vector<8x128xf32>
    %16 = math.tanh %15 : vector<8x128xf32>
    %17 = vector.extract_strided_slice %2 {offsets = [0, 384], sizes = [8, 128], strides = [1, 1]} : vector<8x512xf32> to vector<8x128xf32>
    %18 = arith.negf %17 : vector<8x128xf32>
    %19 = math.exp %18 : vector<8x128xf32>
    %cst_5 = arith.constant 1.000000e+00 : f32
    %20 = vector.broadcast %cst_5 : f32 to vector<8x128xf32>
    %21 = arith.addf %20, %19 : vector<8x128xf32>
    %22 = arith.divf %20, %21 : vector<8x128xf32>
    %c0_6 = arith.constant 0 : index
    %c0_7 = arith.constant 0 : index
    %23 = vector.load %arg2[%c0_6, %c0_7] : memref<8x128xf32, #tpu.memory_space<vmem>>, vector<8x128xf32>
    %24 = arith.mulf %14, %23 : vector<8x128xf32>
    %25 = arith.mulf %8, %16 : vector<8x128xf32>
    %26 = arith.addf %24, %25 : vector<8x128xf32>
    %27 = math.tanh %26 : vector<8x128xf32>
    %28 = arith.mulf %22, %27 : vector<8x128xf32>
    %c0_8 = arith.constant 0 : index
    %c0_9 = arith.constant 0 : index
    %29 = vector.load %arg5[%c0_8, %c0_9] : memref<8x128xf32, #tpu.memory_space<vmem>>, vector<8x128xf32>
    tpu.vector_store %arg5[%c0_8, %c0_9], %26 {strides = array<i32>} : memref<8x128xf32, #tpu.memory_space<vmem>>, vector<8x128xf32>,
    %c0_10 = arith.constant 0 : index
    %c0_11 = arith.constant 0 : index
    %30 = vector.load %arg4[%c0_10, %c0_11] : memref<8x128xf32, #tpu.memory_space<vmem>>, vector<8x128xf32>
    tpu.vector_store %arg4[%c0_10, %c0_11], %28 {strides = array<i32>} : memref<8x128xf32, #tpu.memory_space<vmem>>, vector<8x128xf32>,
    return
  }
  func.func @transform_0(%arg0: i32) -> (i32, i32) {
    %c0_i32 = arith.constant 0 : i32
    %c0_i32_0 = arith.constant 0 : i32
    %c0_i32_1 = arith.constant 0 : i32
    return %c0_i32, %c0_i32_0 : i32, i32
  }
  func.func @transform_1(%arg0: i32) -> (i32, i32) {
    %c0_i32 = arith.constant 0 : i32
    %c0_i32_0 = arith.constant 0 : i32
    return %c0_i32, %arg0 : i32, i32
  }
  func.func @transform_2(%arg0: i32) -> (i32, i32) {
    %c0_i32 = arith.constant 0 : i32
    %c0_i32_0 = arith.constant 0 : i32
    return %c0_i32, %arg0 : i32, i32
  }
  func.func @transform_3(%arg0: i32) -> (i32, i32) {
    %c0_i32 = arith.constant 0 : i32
    %c0_i32_0 = arith.constant 0 : i32
    return %c0_i32, %arg0 : i32, i32
  }
  func.func @transform_4(%arg0: i32) -> (i32, i32) {
    %c0_i32 = arith.constant 0 : i32
    %c0_i32_0 = arith.constant 0 : i32
    return %c0_i32, %arg0 : i32, i32
  }
}

</mosaic_0001>

<bundles_post_ra>
// kernel: _ds_lstm_cell_impl.1
= control target key start
LH: loop header
LB: loop body
LE: loop exit
PB: predicated region body
PF: predicated region fallthrough
CT: control target
= control target key end

     0   :  { %10 = vsyncpa [#allocation3], 0  ;;  %s1358_s0 = inlined_call_operand.hbm [shape: bf16[8,384], index: 0, kind: input, shape index: {}]   ;;  %s1359_s1 = inlined_call_operand.hbm [shape: f32[8,128], index: 1, kind: input, shape index: {}]   ;;  %s1360_s2 = inlined_call_operand.hbm [shape: bf16[384,512], index: 2, kind: input, shape index: {}]   ;;  %s1361_s3 = inlined_call_operand.hbm [shape: f32[8,128], index: 3, kind: output, shape index: {0}]   ;;  %s1362_s4 = inlined_call_operand.hbm [shape: f32[8,128], index: 4, kind: output, shape index: {1}]  }
   0x1   :  { %11 = vsyncpa [#allocation6], 0 }
   0x2   :  { %12 = vsyncpa [#allocation4], 0 }
   0x3   :  { %13 = vsyncpa [#allocation10], 0  ;;  %s1265_s15 = smov [#allocation5]   ;;  %s1266_s17 = smov [#allocation2]  }
   0x4   :  { %s30_s16 = sshll.u32 %s1265_s15, 4  ;;  %s20_s18 = sshll.u32 %s1266_s17, 4  ;;  %s31_s16 = int_to_ptr.vmem [resolvable:$true] %s30_s16  ;;  %s21_s18 = int_to_ptr.vmem [resolvable:$true] %s20_s18 }
   0x5   :  { %s1147_s21 = scalar_lea.hbm %s1359_s1, 128 }
   0x6   :  { %p1148_p0 = scmp.ne.s32.totalorder %s1359_s1, %s1147_s21  ;;  %p1151_p1 = scmp.lt.u32.totalorder %s1147_s21, %s1359_s1 }
   0x8   :  { %p1153_p2 = pnand %p1151_p1, %p1148_p0 }
   0xa   :  { %1156 = shalt.err (!%p1153_p2)
}
   0xb   :  { %s1157_s26 = scalar_lea.vmem %s31_s16, 128  ;;  %p1162_p4 = scmp.lt.s32.totalorder %s31_s16, %s31_s16 }
   0xc   :  { %p1158_p3 = scmp.ne.s32.totalorder %s31_s16, %s1157_s26  ;;  %p1163_p5 = scmp.lt.s32.totalorder %s1157_s26, %s1157_s26 }
   0xe   :  { %p1164_p6 = por %p1163_p5, %p1162_p4 }
  0x10   :  { %p1165_p7 = pnand %p1164_p6, %p1158_p3 }
  0x12   :  { %1168 = shalt.err (!%p1165_p7)
}
  0x13   :  { %33 = dma.hbm_to_vmem [thread:$0]  %s1359_s1, 128, %s31_s16, [#allocation6]  }
  0x14   :  { %s1169_s5 = scalar_lea.hbm %s1358_s0, 192 }
  0x15   :  { %p1170_p8 = scmp.ne.s32.totalorder %s1358_s0, %s1169_s5  ;;  %p1173_p9 = scmp.lt.u32.totalorder %s1169_s5, %s1358_s0 }
  0x17   :  { %p1175_p10 = pnand %p1173_p9, %p1170_p8 }
  0x19   :  { %1178 = shalt.err (!%p1175_p10)
}
  0x1a   :  { %s1179_s10 = scalar_lea.vmem %s21_s18, 192  ;;  %p1184_p12 = scmp.lt.s32.totalorder %s21_s18, %s21_s18 }
  0x1b   :  { %p1180_p11 = scmp.ne.s32.totalorder %s21_s18, %s1179_s10  ;;  %p1185_p13 = scmp.lt.s32.totalorder %s1179_s10, %s1179_s10 }
  0x1d   :  { %p1186_p0 = por %p1185_p13, %p1184_p12 }
  0x1f   :  { %p1187_p1 = pnand %p1186_p0, %p1180_p11 }
  0x21   :  { %1190 = shalt.err (!%p1187_p1)
}
  0x22   :  { %23 = dma.hbm_to_vmem [thread:$0]  %s1358_s0, 192, %s21_s18, [#allocation3]  }
  0x23   :  { %s1267_s12 = smov [#allocation7]   ;;  %s1191_s16 = scalar_lea.hbm %s1360_s2, 12288 }
  0x24   :  { %s39_s13 = sshll.u32 %s1267_s12, 4  ;;  %p1192_p2 = scmp.ne.s32.totalorder %s1360_s2, %s1191_s16  ;;  %s40_s13 = int_to_ptr.vmem [resolvable:$true] %s39_s13 }
  0x25   :  { %p1195_p3 = scmp.lt.u32.totalorder %s1191_s16, %s1360_s2 }
  0x27   :  { %p1197_p4 = pnand %p1195_p3, %p1192_p2 }
  0x29   :  { %1200 = shalt.err (!%p1197_p4)
}
  0x2a   :  { %s1201_s22 = scalar_lea.vmem %s40_s13, 12288  ;;  %p1206_p6 = scmp.lt.s32.totalorder %s40_s13, %s40_s13 }
  0x2b   :  { %p1202_p5 = scmp.ne.s32.totalorder %s40_s13, %s1201_s22  ;;  %p1207_p7 = scmp.lt.s32.totalorder %s1201_s22, %s1201_s22 }
  0x2d   :  { %p1208_p8 = por %p1207_p7, %p1206_p6 }
  0x2f   :  { %p1209_p9 = pnand %p1208_p8, %p1202_p5 }
  0x31   :  { %1212 = shalt.err (!%p1209_p9)
}
  0x32   :  { %s1268_s0 = smov 256   ;;  %s1269_s18 = smov 16  }
  0x33   :  { %45 = dma.hbm_to_vmem [thread:$0]  %s1360_s2, 12288, %s40_s13, [#allocation6], %s1268_s0, %s1268_s0, %s1269_s18  }
  0x34   :  { %1257 = dma.done.wait [#allocation3], 192  }
  0x35   :  { %1258 = vsyncadd [#allocation3], 4294967104 }
  0x36   :  { %1259 = dma.done.wait [#allocation6], 12416  }
  0x37   :  { %1260 = vsyncadd [#allocation6], 4294954880  ;;  %v984_v0 = vld [vmem:[#allocation7 + $0x4] ss:$16 sps:$4 sm:$0xff]   ;;  %v986_v1 = vld [vmem:[#allocation7 + $0xc] ss:$16 sps:$4 sm:$0xff]  }
  0x38   :  { %645 = vmatprep.subr.bf16.mxu0 %v984_v0  ;;  %v988_v2 = vld [vmem:[#allocation7] ss:$16 sps:$4 sm:$0xff]   ;;  %v989_v3 = vld [vmem:[#allocation7 + $0x8] ss:$16 sps:$4 sm:$0xff]   ;;  %727 = vmatprep.subr.bf16.mxu1 %v986_v1  ;;  %v990_v4 = vld [vmem:[#allocation7 + $0x24] ss:$16 sps:$4 sm:$0xff]  }
  0x39   :  { %646 = vmatpush1.bf16.msra.mxu0 %v988_v2  ;;  %728 = vmatpush1.bf16.msra.mxu1 %v989_v3  ;;  %v992_v5 = vld [vmem:[#allocation7 + $0x2c] ss:$16 sps:$4 sm:$0xff]   ;;  %v994_v6 = vld [vmem:[#allocation7 + $0x20] ss:$16 sps:$4 sm:$0xff]   ;;  %v995_v7 = vld [vmem:[#allocation7 + $0x28] ss:$16 sps:$4 sm:$0xff]  }
  0x3a   :  { %647 = vmatprep.subr.bf16.mxu0 %v990_v4  ;;  %729 = vmatprep.subr.bf16.mxu1 %v992_v5  ;;  %v996_v8 = vld [vmem:[#allocation7 + $0x44] ss:$16 sps:$4 sm:$0xff]   ;;  %v998_v9 = vld [vmem:[#allocation7 + $0x4c] ss:$16 sps:$4 sm:$0xff]   ;;  %v1000_v10 = vld [vmem:[#allocation7 + $0x40] ss:$16 sps:$4 sm:$0xff]  }
  0x3b   :  { %v1001_v11 = vld [vmem:[#allocation7 + $0x48] ss:$16 sps:$4 sm:$0xff]   ;;  %v1002_v12 = vld [vmem:[#allocation7 + $0x64] ss:$16 sps:$4 sm:$0xff]   ;;  %v1004_v13 = vld [vmem:[#allocation7 + $0x6c] ss:$16 sps:$4 sm:$0xff]  }
  0x3c   :  { %v1006_v14 = vld [vmem:[#allocation7 + $0x60] ss:$16 sps:$4 sm:$0xff]   ;;  %v1007_v15 = vld [vmem:[#allocation7 + $0x68] ss:$16 sps:$4 sm:$0xff]   ;;  %v1008_v16 = vld [vmem:[#allocation7 + $0x84] ss:$16 sps:$4 sm:$0xff]  }
  0x3d   :  { %648 = vmatpush1.bf16.msra.mxu0 %v994_v6  ;;  %730 = vmatpush1.bf16.msra.mxu1 %v995_v7  ;;  %v1010_v17 = vld [vmem:[#allocation7 + $0x8c] ss:$16 sps:$4 sm:$0xff]   ;;  %v1012_v18 = vld [vmem:[#allocation7 + $0x80] ss:$16 sps:$4 sm:$0xff]   ;;  %v1013_v19 = vld [vmem:[#allocation7 + $0x88] ss:$16 sps:$4 sm:$0xff]  }
  0x3e   :  { %649 = vmatprep.subr.bf16.mxu0 %v996_v8  ;;  %731 = vmatprep.subr.bf16.mxu1 %v998_v9  ;;  %v1014_v20 = vld [vmem:[#allocation7 + $0xa4] ss:$16 sps:$4 sm:$0xff]   ;;  %v1016_v21 = vld [vmem:[#allocation7 + $0xac] ss:$16 sps:$4 sm:$0xff]   ;;  %v1018_v22 = vld [vmem:[#allocation7 + $0xa0] ss:$16 sps:$4 sm:$0xff]  }
  0x3f   :  { %v1019_v23 = vld [vmem:[#allocation7 + $0xa8] ss:$16 sps:$4 sm:$0xff]   ;;  %v1020_v24 = vld [vmem:[#allocation7 + $0xc4] ss:$16 sps:$4 sm:$0xff]   ;;  %v1022_v25 = vld [vmem:[#allocation7 + $0xcc] ss:$16 sps:$4 sm:$0xff]  }
  0x40   :  { %v1024_v26 = vld [vmem:[#allocation7 + $0xc0] ss:$16 sps:$4 sm:$0xff]   ;;  %v1025_v27 = vld [vmem:[#allocation7 + $0xc8] ss:$16 sps:$4 sm:$0xff]   ;;  %v1026_v28 = vld [vmem:[#allocation7 + $0xe4] ss:$16 sps:$4 sm:$0xff]  }
  0x41   :  { %650 = vmatpush1.bf16.msra.mxu0 %v1000_v10  ;;  %732 = vmatpush1.bf16.msra.mxu1 %v1001_v11  ;;  %v1028_v29 = vld [vmem:[#allocation7 + $0xec] ss:$16 sps:$4 sm:$0xff]   ;;  %v1030_v30 = vld [vmem:[#allocation7 + $0xe0] ss:$16 sps:$4 sm:$0xff]   ;;  %v1031_v31 = vld [vmem:[#allocation7 + $0xe8] ss:$16 sps:$4 sm:$0xff]  }
  0x42   :  { %651 = vmatprep.subr.bf16.mxu0 %v1002_v12  ;;  %733 = vmatprep.subr.bf16.mxu1 %v1004_v13  ;;  %v1032_v32 = vld [vmem:[#allocation7 + $0x104] ss:$16 sps:$4 sm:$0xff]   ;;  %v1034_v33 = vld [vmem:[#allocation7 + $0x10c] ss:$16 sps:$4 sm:$0xff]   ;;  %v1036_v34 = vld [vmem:[#allocation7 + $0x100] ss:$16 sps:$4 sm:$0xff]  }
  0x43   :  { %v1037_v35 = vld [vmem:[#allocation7 + $0x108] ss:$16 sps:$4 sm:$0xff]   ;;  %v1038_v36 = vld [vmem:[#allocation7 + $0x124] ss:$16 sps:$4 sm:$0xff]   ;;  %v1040_v37 = vld [vmem:[#allocation7 + $0x12c] ss:$16 sps:$4 sm:$0xff]  }
  0x44   :  { %v1042_v38 = vld [vmem:[#allocation7 + $0x120] ss:$16 sps:$4 sm:$0xff]   ;;  %v1043_v39 = vld [vmem:[#allocation7 + $0x128] ss:$16 sps:$4 sm:$0xff]   ;;  %v1044_v40 = vld [vmem:[#allocation7 + $0x144] ss:$16 sps:$4 sm:$0xff]  }
  0x45   :  { %652 = vmatpush1.bf16.msra.mxu0 %v1006_v14  ;;  %734 = vmatpush1.bf16.msra.mxu1 %v1007_v15  ;;  %v1046_v41 = vld [vmem:[#allocation7 + $0x14c] ss:$16 sps:$4 sm:$0xff]   ;;  %v1048_v42 = vld [vmem:[#allocation7 + $0x140] ss:$16 sps:$4 sm:$0xff]   ;;  %v1049_v43 = vld [vmem:[#allocation7 + $0x148] ss:$16 sps:$4 sm:$0xff]  }
  0x46   :  { %653 = vmatprep.subr.bf16.mxu0 %v1008_v16  ;;  %735 = vmatprep.subr.bf16.mxu1 %v1010_v17  ;;  %v1050_v44 = vld [vmem:[#allocation7 + $0x164] ss:$16 sps:$4 sm:$0xff]   ;;  %v1052_v45 = vld [vmem:[#allocation7 + $0x16c] ss:$16 sps:$4 sm:$0xff]   ;;  %v1054_v47 = vld [vmem:[#allocation7 + $0x160] ss:$16 sps:$4 sm:$0xff]  }
  0x47   :  { %v56_v46 = vld [vmem:[#allocation2] sm:$0xff]  ;;  %v1055_v49 = vld [vmem:[#allocation7 + $0x168] ss:$16 sps:$4 sm:$0xff]   ;;  %v1056_v50 = vld [vmem:[#allocation7 + $0x184] ss:$16 sps:$4 sm:$0xff]   ;;  %v1270_v13 = vmov 0  }
  0x48   :  { %v867_v48 = vcombine.high %v56_v46, %v56_v46  ;;  %v1058_v51 = vld [vmem:[#allocation7 + $0x18c] ss:$16 sps:$4 sm:$0xff]   ;;  %v1060_v52 = vld [vmem:[#allocation7 + $0x180] ss:$16 sps:$4 sm:$0xff]   ;;  %v1061_v53 = vld [vmem:[#allocation7 + $0x188] ss:$16 sps:$4 sm:$0xff]   ;;  %v866_v4 = vcombine.low %v56_v46, %v56_v46 }
  0x49   :  { %654 = vmatpush1.bf16.msra.mxu0 %v1012_v18  ;;  %736 = vmatpush1.bf16.msra.mxu1 %v1013_v19  ;;  %v1062_v54 = vld [vmem:[#allocation7 + $0x1a4] ss:$16 sps:$4 sm:$0xff]   ;;  %v1064_v55 = vld [vmem:[#allocation7 + $0x1ac] ss:$16 sps:$4 sm:$0xff]   ;;  %v1066_v56 = vld [vmem:[#allocation7 + $0x1a0] ss:$16 sps:$4 sm:$0xff]  }
  0x4a   :  { %655 = vmatprep.subr.bf16.mxu0 %v1014_v20  ;;  %737 = vmatprep.subr.bf16.mxu1 %v1016_v21  ;;  %v1067_v57 = vld [vmem:[#allocation7 + $0x1a8] ss:$16 sps:$4 sm:$0xff]   ;;  %v1068_v58 = vld [vmem:[#allocation7 + $0x1c4] ss:$16 sps:$4 sm:$0xff]   ;;  %v1070_v59 = vld [vmem:[#allocation7 + $0x1cc] ss:$16 sps:$4 sm:$0xff]  }
  0x4b   :  { %677 = vmatprep.mubr.bf16.mxu0 %v867_v48  ;;  %759 = vmatprep.mubr.bf16.mxu1 %v867_v48  ;;  %v1072_v60 = vld [vmem:[#allocation7 + $0x1c0] ss:$16 sps:$4 sm:$0xff]   ;;  %v1073_v61 = vld [vmem:[#allocation7 + $0x1c8] ss:$16 sps:$4 sm:$0xff]   ;;  %v1074_v62 = vld [vmem:[#allocation7 + $0x1e4] ss:$16 sps:$4 sm:$0xff]  }
  0x4c   :  { %v1076_v63 = vld [vmem:[#allocation7 + $0x1ec] ss:$16 sps:$4 sm:$0xff]   ;;  %v1078_v0 = vld [vmem:[#allocation7 + $0x1e0] ss:$16 sps:$4 sm:$0xff]   ;;  %v1079_v1 = vld [vmem:[#allocation7 + $0x1e8] ss:$16 sps:$4 sm:$0xff]  }
  0x4d   :  { %656 = vmatpush1.bf16.msra.mxu0 %v1018_v22  ;;  %738 = vmatpush1.bf16.msra.mxu1 %v1019_v23  ;;  %v1084_v2 = vld [vmem:[#allocation7 + $0x204] ss:$16 sps:$4 sm:$0xff]   ;;  %v1087_v3 = vld [vmem:[#allocation7 + $0x20c] ss:$16 sps:$4 sm:$0xff]   ;;  %v1082_v5 = vld [vmem:[#allocation7 + $0x200] ss:$16 sps:$4 sm:$0xff]  }
  0x4e   :  { %657 = vmatprep.subr.bf16.mxu0 %v1020_v24  ;;  %739 = vmatprep.subr.bf16.mxu1 %v1022_v25  ;;  %v1085_v6 = vld [vmem:[#allocation7 + $0x208] ss:$16 sps:$4 sm:$0xff]   ;;  %v1090_v7 = vld [vmem:[#allocation7 + $0x224] ss:$16 sps:$4 sm:$0xff]   ;;  %v1093_v8 = vld [vmem:[#allocation7 + $0x22c] ss:$16 sps:$4 sm:$0xff]  }
  0x4f   :  { %v1088_v9 = vld [vmem:[#allocation7 + $0x220] ss:$16 sps:$4 sm:$0xff]   ;;  %v1091_v10 = vld [vmem:[#allocation7 + $0x228] ss:$16 sps:$4 sm:$0xff]   ;;  %v1096_v11 = vld [vmem:[#allocation7 + $0x244] ss:$16 sps:$4 sm:$0xff]  }
  0x50   :  { %v1099_v12 = vld [vmem:[#allocation7 + $0x24c] ss:$16 sps:$4 sm:$0xff]   ;;  %v1094_v14 = vld [vmem:[#allocation7 + $0x240] ss:$16 sps:$4 sm:$0xff]   ;;  %v1097_v15 = vld [vmem:[#allocation7 + $0x248] ss:$16 sps:$4 sm:$0xff]  }
  0x51   :  { %658 = vmatpush1.bf16.msra.mxu0 %v1024_v26  ;;  %740 = vmatpush1.bf16.msra.mxu1 %v1025_v27  ;;  %v1102_v16 = vld [vmem:[#allocation7 + $0x264] ss:$16 sps:$4 sm:$0xff]   ;;  %v1105_v17 = vld [vmem:[#allocation7 + $0x26c] ss:$16 sps:$4 sm:$0xff]   ;;  %v1100_v18 = vld [vmem:[#allocation7 + $0x260] ss:$16 sps:$4 sm:$0xff]  }
  0x52   :  { %659 = vmatprep.subr.bf16.mxu0 %v1026_v28  ;;  %741 = vmatprep.subr.bf16.mxu1 %v1028_v29  ;;  %v1103_v19 = vld [vmem:[#allocation7 + $0x268] ss:$16 sps:$4 sm:$0xff]   ;;  %v1108_v20 = vld [vmem:[#allocation7 + $0x284] ss:$16 sps:$4 sm:$0xff]   ;;  %v1111_v21 = vld [vmem:[#allocation7 + $0x28c] ss:$16 sps:$4 sm:$0xff]  }
  0x53   :  { %v1106_v22 = vld [vmem:[#allocation7 + $0x280] ss:$16 sps:$4 sm:$0xff]   ;;  %v1109_v23 = vld [vmem:[#allocation7 + $0x288] ss:$16 sps:$4 sm:$0xff]   ;;  %v1114_v24 = vld [vmem:[#allocation7 + $0x2a4] ss:$16 sps:$4 sm:$0xff]  }
  0x54   :  { %v1117_v25 = vld [vmem:[#allocation7 + $0x2ac] ss:$16 sps:$4 sm:$0xff]   ;;  %v1112_v26 = vld [vmem:[#allocation7 + $0x2a0] ss:$16 sps:$4 sm:$0xff]   ;;  %v1115_v27 = vld [vmem:[#allocation7 + $0x2a8] ss:$16 sps:$4 sm:$0xff]  }
  0x55   :  { %660 = vmatpush1.bf16.msra.mxu0 %v1030_v30  ;;  %742 = vmatpush1.bf16.msra.mxu1 %v1031_v31  ;;  %v1120_v28 = vld [vmem:[#allocation7 + $0x2c4] ss:$16 sps:$4 sm:$0xff]   ;;  %v1123_v29 = vld [vmem:[#allocation7 + $0x2cc] ss:$16 sps:$4 sm:$0xff]   ;;  %v1118_v30 = vld [vmem:[#allocation7 + $0x2c0] ss:$16 sps:$4 sm:$0xff]  }
  0x56   :  { %661 = vmatprep.subr.bf16.mxu0 %v1032_v32  ;;  %743 = vmatprep.subr.bf16.mxu1 %v1034_v33  ;;  %v1121_v31 = vld [vmem:[#allocation7 + $0x2c8] ss:$16 sps:$4 sm:$0xff]   ;;  %v1126_v32 = vld [vmem:[#allocation7 + $0x2e4] ss:$16 sps:$4 sm:$0xff]   ;;  %v1129_v33 = vld [vmem:[#allocation7 + $0x2ec] ss:$16 sps:$4 sm:$0xff]  }
  0x57   :  { %s1271_s2 = smov [#allocation9]  }
  0x58   :  { %s852_s25 = sshll.u32 %s1271_s2, 4  ;;  %s853_s25 = int_to_ptr.vmem [resolvable:$true] %s852_s25 }
  0x59   :  { %662 = vmatpush1.bf16.msra.mxu0 %v1036_v34  ;;  %744 = vmatpush1.bf16.msra.mxu1 %v1037_v35  ;;  %v1124_v34 = vld [vmem:[#allocation7 + $0x2e0] ss:$16 sps:$4 sm:$0xff]   ;;  %v1127_v35 = vld [vmem:[#allocation7 + $0x2e8] ss:$16 sps:$4 sm:$0xff]   ;;  %s1213_s26 = scalar_lea.vmem %s853_s25, 128  ;;  %p1218_p11 = scmp.lt.s32.totalorder %s853_s25, %s853_s25 }
  0x5a   :  { %663 = vmatprep.subr.bf16.mxu0 %v1038_v36  ;;  %745 = vmatprep.subr.bf16.mxu1 %v1040_v37  ;;  %v1130_v36 = vld [vmem:[#allocation2 + $0x8] ss:$0 sps:$4 sm:$0xff]   ;;  %p1214_p10 = scmp.ne.s32.totalorder %s853_s25, %s1213_s26  ;;  %p1219_p12 = scmp.lt.s32.totalorder %s1213_s26, %s1213_s26 }
  0x5c   :  { %p1220_p13 = por %p1219_p12, %p1218_p11 }
  0x5d   :  { %664 = vmatpush1.bf16.msra.mxu0 %v1042_v38  ;;  %746 = vmatpush1.bf16.msra.mxu1 %v1043_v39 }
  0x5e   :  { %665 = vmatprep.subr.bf16.mxu0 %v1044_v40  ;;  %747 = vmatprep.subr.bf16.mxu1 %v1046_v41  ;;  %p1221_p0 = pnand %p1220_p13, %p1214_p10 }
  0x61   :  { %666 = vmatpush1.bf16.msra.mxu0 %v1048_v42  ;;  %748 = vmatpush1.bf16.msra.mxu1 %v1049_v43 }
  0x62   :  { %667 = vmatprep.subr.bf16.mxu0 %v1050_v44  ;;  %749 = vmatprep.subr.bf16.mxu1 %v1052_v45 }
  0x65   :  { %668 = vmatpush1.bf16.msra.mxu0 %v1054_v47  ;;  %750 = vmatpush1.bf16.msra.mxu1 %v1055_v49 }
  0x66   :  { %669 = vmatprep.subr.bf16.mxu0 %v1056_v50  ;;  %751 = vmatprep.subr.bf16.mxu1 %v1058_v51 }
  0x69   :  { %670 = vmatpush1.bf16.msra.mxu0 %v1060_v52  ;;  %752 = vmatpush1.bf16.msra.mxu1 %v1061_v53 }
  0x6a   :  { %671 = vmatprep.subr.bf16.mxu0 %v1062_v54  ;;  %753 = vmatprep.subr.bf16.mxu1 %v1064_v55  ;;  %v828_v54 = vld [vmem:[#allocation5] sm:$0xff] }
  0x6d   :  { %672 = vmatpush1.bf16.msra.mxu0 %v1066_v56  ;;  %754 = vmatpush1.bf16.msra.mxu1 %v1067_v57 }
  0x6e   :  { %673 = vmatprep.subr.bf16.mxu0 %v1068_v58  ;;  %755 = vmatprep.subr.bf16.mxu1 %v1070_v59 }
  0x71   :  { %674 = vmatpush1.bf16.msra.mxu0 %v1072_v60  ;;  %756 = vmatpush1.bf16.msra.mxu1 %v1073_v61 }
  0x72   :  { %675 = vmatprep.subr.bf16.mxu0 %v1074_v62  ;;  %757 = vmatprep.subr.bf16.mxu1 %v1076_v63 }
  0x75   :  { %676 = vmatpush1.bf16.msra.mxu0 %v1078_v0  ;;  %758 = vmatpush1.bf16.msra.mxu1 %v1079_v1 }
  0x76   :  { %686 = vmatprep.subr.bf16.mxu0 %v1084_v2  ;;  %768 = vmatprep.subr.bf16.mxu1 %v1087_v3 }
  0x78   :  { %678 = vmatmul.mubr.bf16.vlgmr.msra.gmra.mrb[0].mxu0 %v866_v4  ;;  %760 = vmatmul.mubr.bf16.vlgmr.msra.gmra.mrb[0].mxu1 %v866_v4 }
  0x79   :  { %687 = vmatpush1.bf16.msra.mxu0 %v1082_v5  ;;  %769 = vmatpush1.bf16.msra.mxu1 %v1085_v6 }
  0x7a   :  { %688 = vmatprep.subr.bf16.mxu0 %v1090_v7  ;;  %770 = vmatprep.subr.bf16.mxu1 %v1093_v8 }
  0x7b   :  { %718 = vmatprep.mubr.bf16.mxu0 %v1270_v13  ;;  %800 = vmatprep.mubr.bf16.mxu1 %v1270_v13 }
  0x7d   :  { %689 = vmatpush1.bf16.msra.mxu0 %v1088_v9  ;;  %771 = vmatpush1.bf16.msra.mxu1 %v1091_v10 }
  0x7e   :  { %690 = vmatprep.subr.bf16.mxu0 %v1096_v11  ;;  %772 = vmatprep.subr.bf16.mxu1 %v1099_v12 }
  0x81   :  { %691 = vmatpush1.bf16.msra.mxu0 %v1094_v14  ;;  %773 = vmatpush1.bf16.msra.mxu1 %v1097_v15 }
  0x82   :  { %692 = vmatprep.subr.bf16.mxu0 %v1102_v16  ;;  %774 = vmatprep.subr.bf16.mxu1 %v1105_v17 }
  0x85   :  { %693 = vmatpush1.bf16.msra.mxu0 %v1100_v18  ;;  %775 = vmatpush1.bf16.msra.mxu1 %v1103_v19 }
  0x86   :  { %694 = vmatprep.subr.bf16.mxu0 %v1108_v20  ;;  %776 = vmatprep.subr.bf16.mxu1 %v1111_v21 }
  0x89   :  { %695 = vmatpush1.bf16.msra.mxu0 %v1106_v22  ;;  %777 = vmatpush1.bf16.msra.mxu1 %v1109_v23 }
  0x8a   :  { %696 = vmatprep.subr.bf16.mxu0 %v1114_v24  ;;  %778 = vmatprep.subr.bf16.mxu1 %v1117_v25 }
  0x8d   :  { %697 = vmatpush1.bf16.msra.mxu0 %v1112_v26  ;;  %779 = vmatpush1.bf16.msra.mxu1 %v1115_v27 }
  0x8e   :  { %698 = vmatprep.subr.bf16.mxu0 %v1120_v28  ;;  %780 = vmatprep.subr.bf16.mxu1 %v1123_v29 }
  0x91   :  { %699 = vmatpush1.bf16.msra.mxu0 %v1118_v30  ;;  %781 = vmatpush1.bf16.msra.mxu1 %v1121_v31 }
  0x92   :  { %700 = vmatprep.subr.bf16.mxu0 %v1126_v32  ;;  %782 = vmatprep.subr.bf16.mxu1 %v1129_v33 }
  0x95   :  { %701 = vmatpush1.bf16.msra.mxu0 %v1124_v34  ;;  %783 = vmatpush1.bf16.msra.mxu1 %v1127_v35 }
  0x98   :  { %719 = vmatmul.mubr.bf16.vlgmr.msra.gmra.mrb[0].mxu0 %v1130_v36  ;;  %801 = vmatmul.mubr.bf16.vlgmr.msra.gmra.mrb[0].mxu1 %v1130_v36 }
 0x16b   :  { %v720_v37 = vpop.f32.mrb[0].mxu0  ;;  %v802_v38 = vpop.f32.mrb[0].mxu1 }
 0x16c   :  { %v965_v39 = vmul.f32 -1.442695, %v720_v37  ;;  %v722_v40 = vpop.f32.mrb[1].mxu0  ;;  %v804_v41 = vpop.f32.mrb[1].mxu1 }
 0x16d   :  { %v966_v42 = vmul.f32 -1.442695, %v722_v40  ;;  %v724_v43 = vpop.f32.mrb[2].mxu0  ;;  %v806_v44 = vpop.f32.mrb[2].mxu1  ;;  %v967_v47 = vmul.f32 -1.442695, %v804_v41 }
 0x16e   :  { %1131 = vpow2.f32 %v965_v39  ;;  %v725_v45 = vpop.f32.mrb[3].mxu0  ;;  %v807_v46 = vpop.f32.mrb[3].mxu1 }
 0x16f   :  { %1133 = vpow2.f32 %v966_v42 }
 0x170   :  { %1135 = vpow2.f32 %v967_v47 }
 0x171   :  { %1137 = vtanh.f32 %v802_v38 }
 0x178   :  { %v1132_v48 = vpop.eup %1131 }
 0x179   :  { %v1134_v49 = vpop.eup %1133  ;;  %v812_v50 = vadd.f32 1.0, %v1132_v48 }
 0x17a   :  { %v818_v51 = vadd.f32 1.0, %v1134_v49  ;;  %v1136_v52 = vpop.eup %1135 }
 0x17b   :  { %1139 = vrcp.f32 %v812_v50  ;;  %v1138_v53 = vpop.eup %1137  ;;  %v825_v58 = vadd.f32 1.0, %v1136_v52 }
 0x17c   :  { %1141 = vrcp.f32 %v818_v51 }
 0x17d   :  { %1143 = vrcp.f32 %v825_v58 }
 0x185   :  { %v1140_v55 = vpop.eup %1139 }
 0x186   :  { %v1142_v56 = vpop.eup %1141  ;;  %v830_v57 = vmul.f32 %v1140_v55, %v1138_v53 }
 0x187   :  { %v829_v59 = vmul.f32 %v1142_v56, %v828_v54 }
 0x189   :  { %v831_v60 = vadd.f32 %v830_v57, %v829_v59 }
 0x18b   :  { %1145 = vtanh.f32 %v831_v60  ;;  %834 = vst [vmem:[#allocation9] sm:$0xff] %v831_v60 }
 0x18c   :  { %1224 = shalt.err (!%p1221_p0)
}
 0x18d   :  { %s1225_s29 = scalar_lea.hbm %s1362_s4, 128 }
 0x18e   :  { %p1226_p1 = scmp.ne.s32.totalorder %s1362_s4, %s1225_s29  ;;  %p1229_p2 = scmp.lt.u32.totalorder %s1225_s29, %s1362_s4 }
 0x190   :  { %p1231_p3 = pnand %p1229_p2, %p1226_p1 }
 0x192   :  { %1234 = shalt.err (!%p1231_p3)
}
 0x193   :  { %855 = dma.vmem_to_hbm [thread:$0]  %s853_s25, 128, %s1362_s4, [#allocation10]   ;;  %v1144_v61 = vpop.eup %1143 }
 0x194   :  { %s1272_s10 = smov [#allocation8]  }
 0x195   :  { %s842_s1 = sshll.u32 %s1272_s10, 4  ;;  %v1146_v62 = vpop.eup %1145  ;;  %s843_s1 = int_to_ptr.vmem [resolvable:$true] %s842_s1 }
 0x196   :  { %v833_v63 = vmul.f32 %v1146_v62, %v1144_v61  ;;  %s1235_s11 = scalar_lea.vmem %s843_s1, 128  ;;  %p1240_p5 = scmp.lt.s32.totalorder %s843_s1, %s843_s1 }
 0x197   :  { %p1236_p4 = scmp.ne.s32.totalorder %s843_s1, %s1235_s11  ;;  %p1241_p6 = scmp.lt.s32.totalorder %s1235_s11, %s1235_s11 }
 0x198   :  { %835 = vst [vmem:[#allocation8] sm:$0xff] %v833_v63 }
 0x199   :  { %p1242_p7 = por %p1241_p6, %p1240_p5 }
 0x19b   :  { %p1243_p8 = pnand %p1242_p7, %p1236_p4 }
 0x19d   :  { %1246 = shalt.err (!%p1243_p8)
}
 0x19e   :  { %s1247_s14 = scalar_lea.hbm %s1361_s3, 128 }
 0x19f   :  { %p1248_p9 = scmp.ne.s32.totalorder %s1361_s3, %s1247_s14  ;;  %p1251_p10 = scmp.lt.u32.totalorder %s1247_s14, %s1361_s3 }
 0x1a1   :  { %p1253_p11 = pnand %p1251_p10, %p1248_p9 }
 0x1a3   :  { %1256 = shalt.err (!%p1253_p11)
}
 0x1a4   :  { %845 = dma.vmem_to_hbm [thread:$0]  %s843_s1, 128, %s1361_s3, [#allocation4]  }
 0x1a5   :  { %1261 = dma.done.wait [#allocation4], 128  }
 0x1a6   :  { %1262 = vsyncadd [#allocation4], 4294967168 }
 0x1a7   :  { %1263 = dma.done.wait [#allocation10], 128  }
 0x1a8   :  { %1264 = vsyncadd [#allocation10], 4294967168 }
 0x1a9   :  { %862 = vsyncpa [#allocation3], 1 }
 0x1aa   :  { %863 = vsyncpa [#allocation6], 1 }
 0x1ab   :  { %864 = vsyncpa [#allocation4], 1 }
 0x1ac   :  { %865 = vsyncpa [#allocation10], 1 }

</bundles_post_ra>
